<compile_context>
chip_gen: v5e
topology: v5e:2x2
jax: 0.10.0
libtpu: 0.0.40
codegen_flags: <defaults>
</compile_context>

<pallas_src>
import functools

import jax
import jax.numpy as jnp
from jax.experimental import pallas as pl
from jax.experimental.pallas import tpu as pltpu


def _round_up(v, m):
    return (v + m - 1) // m * m


def _conv_shift_mm_kernel(x_ref, w_ref, b_ref, o_ref, *, shifts, c_out_pad, lmm):
    """One batch element: VALID conv as a sum of lane-shifted matmuls.

    x_ref: (1, C_in_pad, L_pad)           bf16  row-major flattened padded image
    w_ref: (KH*KW, C_out_pad, C_in_pad)   bf16  per-tap weight matrices
    b_ref: (C_out_pad, 1)                 f32
    o_ref: (1, C_out_pad, LMM)            f32   "wide" output (cols w >= WO junk)
    """
    # f32 bias initialises the accumulator -> no separate epilogue add.
    acc = jnp.broadcast_to(b_ref[...], (c_out_pad, lmm)).astype(jnp.float32)
    for tap, shift in enumerate(shifts):            # statically unrolled KH*KW taps
        xs = x_ref[0, :, shift:shift + lmm]         # (C_in_pad, LMM) bf16, lane-shifted
        acc = acc + jnp.dot(w_ref[tap], xs, preferred_element_type=jnp.float32)
    o_ref[0] = acc


def conv2d_pallas(x, weight, bias):
    """Conv2d, stride=1, padding=0 (VALID). x NCHW f32, weight (C_out,C_in,KH,KW)."""
    N, C_in, H, W = x.shape
    C_out, _, KH, KW = weight.shape
    HO, WO = H - KH + 1, W - KW + 1

    C_in_pad = _round_up(C_in, 8)
    C_out_pad = _round_up(C_out, 8)
    LMM = _round_up(HO * W, 128)                       # wide-output lanes / image
    max_shift = (KH - 1) * W + (KW - 1)
    L_pad = _round_up(max(H * W, max_shift + LMM), 128)  # padded input lanes / image

    # ---- wrapper-side prep: reshape + small zero pads only (no im2col) ----
    x_flat = x.reshape(N, C_in, H * W)
    x_p = jnp.pad(
        x_flat, ((0, 0), (0, C_in_pad - C_in), (0, L_pad - H * W))
    ).astype(jnp.bfloat16)

    w_taps = weight.transpose(2, 3, 0, 1).reshape(KH * KW, C_out, C_in)
    w_p = jnp.pad(
        w_taps, ((0, 0), (0, C_out_pad - C_out), (0, C_in_pad - C_in))
    ).astype(jnp.bfloat16)

    b_p = jnp.pad(bias, (0, C_out_pad - C_out)).reshape(C_out_pad, 1).astype(jnp.float32)

    shifts = tuple(kh * W + kw for kh in range(KH) for kw in range(KW))
    kernel = functools.partial(
        _conv_shift_mm_kernel, shifts=shifts, c_out_pad=C_out_pad, lmm=LMM
    )

    cost = pl.CostEstimate(
        flops=2 * N * len(shifts) * C_out_pad * C_in_pad * LMM,
        transcendentals=0,
        bytes_accessed=(x_p.size * 2 + w_p.size * 2 + b_p.size * 4
                        + N * C_out_pad * LMM * 4),
    )

    out_wide = pl.pallas_call(
        kernel,
        out_shape=jax.ShapeDtypeStruct((N, C_out_pad, LMM), jnp.float32),
        grid=(N,),
        in_specs=[
            pl.BlockSpec((1, C_in_pad, L_pad), lambda n: (n, 0, 0)),
            pl.BlockSpec((KH * KW, C_out_pad, C_in_pad), lambda n: (0, 0, 0)),
            pl.BlockSpec((C_out_pad, 1), lambda n: (0, 0)),
        ],
        out_specs=pl.BlockSpec((1, C_out_pad, LMM), lambda n: (n, 0, 0)),
        compiler_params=pltpu.CompilerParams(dimension_semantics=("parallel",)),
        cost_estimate=cost,
    )(x_p, w_p, b_p)

    # Wide output -> NCHW via slice + reshape only (no transpose).
    out = out_wide[:, :C_out, :HO * W].reshape(N, C_out, HO, W)[:, :, :, :WO]
    return out


if __name__ == "__main__":
    key = jax.random.PRNGKey(0)
    k_x, k_w, k_b = jax.random.split(key, 3)

    # Module shapes: Conv2d(3, 6, kernel_size=3, stride=1, padding=0)
    N, C_in, H, W = 2, 3, 16, 16
    C_out, KH, KW = 6, 3, 3

    x = jax.random.normal(k_x, (N, C_in, H, W), dtype=jnp.float32)

    # Deterministic init mimicking PyTorch default (uniform +/- 1/sqrt(fan_in))
    fan_in = C_in * KH * KW
    bound = 1.0 / jnp.sqrt(fan_in)
    weight = jax.random.uniform(k_w, (C_out, C_in, KH, KW), jnp.float32, -bound, bound)
    bias = jax.random.uniform(k_b, (C_out,), jnp.float32, -bound, bound)

    conv = jax.jit(conv2d_pallas)
    y = conv(x, weight, bias)
    y = jax.block_until_ready(y)
    assert y.shape == (N, C_out, H - KH + 1, W - KW + 1)
    assert y.dtype == jnp.float32

    # Reference 1: XLA conv with the same bf16 operand rounding + f32 accumulation
    # and f32 bias.
    y_ref = jax.lax.conv_general_dilated(
        x.astype(jnp.bfloat16), weight.astype(jnp.bfloat16),
        window_strides=(1, 1), padding="VALID",
        dimension_numbers=("NCHW", "OIHW", "NCHW"),
        preferred_element_type=jnp.float32,
    ) + bias.reshape(1, C_out, 1, 1)
    assert jnp.allclose(y, y_ref, atol=1e-4, rtol=1e-3), \
        float(jnp.max(jnp.abs(y - y_ref)))

    # Reference 2: loose sanity check against the full-f32 conv (bounds bf16 error).
    y_f32 = jax.lax.conv_general_dilated(
        x, weight, window_strides=(1, 1), padding="VALID",
        dimension_numbers=("NCHW", "OIHW", "NCHW"),
    ) + bias.reshape(1, C_out, 1, 1)
    assert jnp.allclose(y, y_f32, atol=5e-2, rtol=5e-2), \
        float(jnp.max(jnp.abs(y - y_f32)))

    print("KERNEL_OK")
</pallas_src>

<mosaic_0001>
module attributes {stable_mosaic.version = 11 : i64} {
  func.func @_conv_shift_mm_kernel(%arg0: i32, %arg1: memref<1x8x384xbf16, #tpu.memory_space<vmem>>, %arg2: memref<9x8x8xbf16, #tpu.memory_space<vmem>>, %arg3: memref<8x1xf32, #tpu.memory_space<vmem>>, %arg4: memref<1x8x256xf32, #tpu.memory_space<vmem>>) attributes {dimension_semantics = [#tpu.dimension_semantics<parallel>], iteration_bounds = array<i64: 2>, scalar_prefetch = 0 : i64, scratch_operands = 0 : i64, tpu.core_type = #tpu.core_type<tc>, window_params = [{transform_indices = @transform_0, window_bounds = array<i64: 1, 8, 384>}, {pipeline_mode = #tpu.pipeline_mode<synchronous>, transform_indices = @transform_1, window_bounds = array<i64: 9, 8, 8>}, {pipeline_mode = #tpu.pipeline_mode<synchronous>, transform_indices = @transform_2, window_bounds = array<i64: 8, 1>}, {transform_indices = @transform_3, window_bounds = array<i64: 1, 8, 256>}]} {
    %c0 = arith.constant 0 : index
    %c0_0 = arith.constant 0 : index
    %0 = vector.load %arg3[%c0, %c0_0] : memref<8x1xf32, #tpu.memory_space<vmem>>, vector<8x1xf32>
    %1 = vector.shape_cast %0 : vector<8x1xf32> to vector<8x1xf32>
    %2 = vector.broadcast %1 : vector<8x1xf32> to vector<8x256xf32>
    %c0_1 = arith.constant 0 : index
    %c0_2 = arith.constant 0 : index
    %c0_3 = arith.constant 0 : index
    %3 = vector.load %arg1[%c0_1, %c0_2, %c0_3] : memref<1x8x384xbf16, #tpu.memory_space<vmem>>, vector<1x8x256xbf16>
    %4 = vector.shape_cast %3 : vector<1x8x256xbf16> to vector<8x256xbf16>
    %c0_4 = arith.constant 0 : index
    %c0_5 = arith.constant 0 : index
    %c0_6 = arith.constant 0 : index
    %5 = vector.load %arg2[%c0_4, %c0_5, %c0_6] : memref<9x8x8xbf16, #tpu.memory_space<vmem>>, vector<1x8x8xbf16>
    %6 = vector.shape_cast %5 : vector<1x8x8xbf16> to vector<8x8xbf16>
    %cst = arith.constant dense<0.000000e+00> : vector<8x256xf32>
    %7 = tpu.matmul %6, %4, %cst {dimension_numbers = #tpu.dot_dimension_numbers<[1], [0], [0], [1], [0, 0, 1, 1], [], []>} : vector<8x8xbf16>, vector<8x256xbf16>, vector<8x256xf32> -> vector<8x256xf32>
    %8 = arith.addf %2, %7 : vector<8x256xf32>
    %c0_7 = arith.constant 0 : index
    %c0_8 = arith.constant 0 : index
    %c1 = arith.constant 1 : index
    %9 = vector.load %arg1[%c0_7, %c0_8, %c1] : memref<1x8x384xbf16, #tpu.memory_space<vmem>>, vector<1x8x256xbf16>
    %10 = vector.shape_cast %9 : vector<1x8x256xbf16> to vector<8x256xbf16>
    %c1_9 = arith.constant 1 : index
    %c0_10 = arith.constant 0 : index
    %c0_11 = arith.constant 0 : index
    %11 = vector.load %arg2[%c1_9, %c0_10, %c0_11] : memref<9x8x8xbf16, #tpu.memory_space<vmem>>, vector<1x8x8xbf16>
    %12 = vector.shape_cast %11 : vector<1x8x8xbf16> to vector<8x8xbf16>
    %cst_12 = arith.constant dense<0.000000e+00> : vector<8x256xf32>
    %13 = tpu.matmul %12, %10, %cst_12 {dimension_numbers = #tpu.dot_dimension_numbers<[1], [0], [0], [1], [0, 0, 1, 1], [], []>} : vector<8x8xbf16>, vector<8x256xbf16>, vector<8x256xf32> -> vector<8x256xf32>
    %14 = arith.addf %8, %13 : vector<8x256xf32>
    %c0_13 = arith.constant 0 : index
    %c0_14 = arith.constant 0 : index
    %c2 = arith.constant 2 : index
    %15 = vector.load %arg1[%c0_13, %c0_14, %c2] : memref<1x8x384xbf16, #tpu.memory_space<vmem>>, vector<1x8x256xbf16>
    %16 = vector.shape_cast %15 : vector<1x8x256xbf16> to vector<8x256xbf16>
    %c2_15 = arith.constant 2 : index
    %c0_16 = arith.constant 0 : index
    %c0_17 = arith.constant 0 : index
    %17 = vector.load %arg2[%c2_15, %c0_16, %c0_17] : memref<9x8x8xbf16, #tpu.memory_space<vmem>>, vector<1x8x8xbf16>
    %18 = vector.shape_cast %17 : vector<1x8x8xbf16> to vector<8x8xbf16>
    %cst_18 = arith.constant dense<0.000000e+00> : vector<8x256xf32>
    %19 = tpu.matmul %18, %16, %cst_18 {dimension_numbers = #tpu.dot_dimension_numbers<[1], [0], [0], [1], [0, 0, 1, 1], [], []>} : vector<8x8xbf16>, vector<8x256xbf16>, vector<8x256xf32> -> vector<8x256xf32>
    %20 = arith.addf %14, %19 : vector<8x256xf32>
    %c0_19 = arith.constant 0 : index
    %c0_20 = arith.constant 0 : index
    %c16 = arith.constant 16 : index
    %21 = vector.load %arg1[%c0_19, %c0_20, %c16] : memref<1x8x384xbf16, #tpu.memory_space<vmem>>, vector<1x8x256xbf16>
    %22 = vector.shape_cast %21 : vector<1x8x256xbf16> to vector<8x256xbf16>
    %c3 = arith.constant 3 : index
    %c0_21 = arith.constant 0 : index
    %c0_22 = arith.constant 0 : index
    %23 = vector.load %arg2[%c3, %c0_21, %c0_22] : memref<9x8x8xbf16, #tpu.memory_space<vmem>>, vector<1x8x8xbf16>
    %24 = vector.shape_cast %23 : vector<1x8x8xbf16> to vector<8x8xbf16>
    %cst_23 = arith.constant dense<0.000000e+00> : vector<8x256xf32>
    %25 = tpu.matmul %24, %22, %cst_23 {dimension_numbers = #tpu.dot_dimension_numbers<[1], [0], [0], [1], [0, 0, 1, 1], [], []>} : vector<8x8xbf16>, vector<8x256xbf16>, vector<8x256xf32> -> vector<8x256xf32>
    %26 = arith.addf %20, %25 : vector<8x256xf32>
    %c0_24 = arith.constant 0 : index
    %c0_25 = arith.constant 0 : index
    %c17 = arith.constant 17 : index
    %27 = vector.load %arg1[%c0_24, %c0_25, %c17] : memref<1x8x384xbf16, #tpu.memory_space<vmem>>, vector<1x8x256xbf16>
    %28 = vector.shape_cast %27 : vector<1x8x256xbf16> to vector<8x256xbf16>
    %c4 = arith.constant 4 : index
    %c0_26 = arith.constant 0 : index
    %c0_27 = arith.constant 0 : index
    %29 = vector.load %arg2[%c4, %c0_26, %c0_27] : memref<9x8x8xbf16, #tpu.memory_space<vmem>>, vector<1x8x8xbf16>
    %30 = vector.shape_cast %29 : vector<1x8x8xbf16> to vector<8x8xbf16>
    %cst_28 = arith.constant dense<0.000000e+00> : vector<8x256xf32>
    %31 = tpu.matmul %30, %28, %cst_28 {dimension_numbers = #tpu.dot_dimension_numbers<[1], [0], [0], [1], [0, 0, 1, 1], [], []>} : vector<8x8xbf16>, vector<8x256xbf16>, vector<8x256xf32> -> vector<8x256xf32>
    %32 = arith.addf %26, %31 : vector<8x256xf32>
    %c0_29 = arith.constant 0 : index
    %c0_30 = arith.constant 0 : index
    %c18 = arith.constant 18 : index
    %33 = vector.load %arg1[%c0_29, %c0_30, %c18] : memref<1x8x384xbf16, #tpu.memory_space<vmem>>, vector<1x8x256xbf16>
    %34 = vector.shape_cast %33 : vector<1x8x256xbf16> to vector<8x256xbf16>
    %c5 = arith.constant 5 : index
    %c0_31 = arith.constant 0 : index
    %c0_32 = arith.constant 0 : index
    %35 = vector.load %arg2[%c5, %c0_31, %c0_32] : memref<9x8x8xbf16, #tpu.memory_space<vmem>>, vector<1x8x8xbf16>
    %36 = vector.shape_cast %35 : vector<1x8x8xbf16> to vector<8x8xbf16>
    %cst_33 = arith.constant dense<0.000000e+00> : vector<8x256xf32>
    %37 = tpu.matmul %36, %34, %cst_33 {dimension_numbers = #tpu.dot_dimension_numbers<[1], [0], [0], [1], [0, 0, 1, 1], [], []>} : vector<8x8xbf16>, vector<8x256xbf16>, vector<8x256xf32> -> vector<8x256xf32>
    %38 = arith.addf %32, %37 : vector<8x256xf32>
    %c0_34 = arith.constant 0 : index
    %c0_35 = arith.constant 0 : index
    %c32 = arith.constant 32 : index
    %39 = vector.load %arg1[%c0_34, %c0_35, %c32] : memref<1x8x384xbf16, #tpu.memory_space<vmem>>, vector<1x8x256xbf16>
    %40 = vector.shape_cast %39 : vector<1x8x256xbf16> to vector<8x256xbf16>
    %c6 = arith.constant 6 : index
    %c0_36 = arith.constant 0 : index
    %c0_37 = arith.constant 0 : index
    %41 = vector.load %arg2[%c6, %c0_36, %c0_37] : memref<9x8x8xbf16, #tpu.memory_space<vmem>>, vector<1x8x8xbf16>
    %42 = vector.shape_cast %41 : vector<1x8x8xbf16> to vector<8x8xbf16>
    %cst_38 = arith.constant dense<0.000000e+00> : vector<8x256xf32>
    %43 = tpu.matmul %42, %40, %cst_38 {dimension_numbers = #tpu.dot_dimension_numbers<[1], [0], [0], [1], [0, 0, 1, 1], [], []>} : vector<8x8xbf16>, vector<8x256xbf16>, vector<8x256xf32> -> vector<8x256xf32>
    %44 = arith.addf %38, %43 : vector<8x256xf32>
    %c0_39 = arith.constant 0 : index
    %c0_40 = arith.constant 0 : index
    %c33 = arith.constant 33 : index
    %45 = vector.load %arg1[%c0_39, %c0_40, %c33] : memref<1x8x384xbf16, #tpu.memory_space<vmem>>, vector<1x8x256xbf16>
    %46 = vector.shape_cast %45 : vector<1x8x256xbf16> to vector<8x256xbf16>
    %c7 = arith.constant 7 : index
    %c0_41 = arith.constant 0 : index
    %c0_42 = arith.constant 0 : index
    %47 = vector.load %arg2[%c7, %c0_41, %c0_42] : memref<9x8x8xbf16, #tpu.memory_space<vmem>>, vector<1x8x8xbf16>
    %48 = vector.shape_cast %47 : vector<1x8x8xbf16> to vector<8x8xbf16>
    %cst_43 = arith.constant dense<0.000000e+00> : vector<8x256xf32>
    %49 = tpu.matmul %48, %46, %cst_43 {dimension_numbers = #tpu.dot_dimension_numbers<[1], [0], [0], [1], [0, 0, 1, 1], [], []>} : vector<8x8xbf16>, vector<8x256xbf16>, vector<8x256xf32> -> vector<8x256xf32>
    %50 = arith.addf %44, %49 : vector<8x256xf32>
    %c0_44 = arith.constant 0 : index
    %c0_45 = arith.constant 0 : index
    %c34 = arith.constant 34 : index
    %51 = vector.load %arg1[%c0_44, %c0_45, %c34] : memref<1x8x384xbf16, #tpu.memory_space<vmem>>, vector<1x8x256xbf16>
    %52 = vector.shape_cast %51 : vector<1x8x256xbf16> to vector<8x256xbf16>
    %c8 = arith.constant 8 : index
    %c0_46 = arith.constant 0 : index
    %c0_47 = arith.constant 0 : index
    %53 = vector.load %arg2[%c8, %c0_46, %c0_47] : memref<9x8x8xbf16, #tpu.memory_space<vmem>>, vector<1x8x8xbf16>
    %54 = vector.shape_cast %53 : vector<1x8x8xbf16> to vector<8x8xbf16>
    %cst_48 = arith.constant dense<0.000000e+00> : vector<8x256xf32>
    %55 = tpu.matmul %54, %52, %cst_48 {dimension_numbers = #tpu.dot_dimension_numbers<[1], [0], [0], [1], [0, 0, 1, 1], [], []>} : vector<8x8xbf16>, vector<8x256xbf16>, vector<8x256xf32> -> vector<8x256xf32>
    %56 = arith.addf %50, %55 : vector<8x256xf32>
    %c0_49 = arith.constant 0 : index
    %c0_50 = arith.constant 0 : index
    %c0_51 = arith.constant 0 : index
    %57 = vector.load %arg4[%c0_49, %c0_50, %c0_51] : memref<1x8x256xf32, #tpu.memory_space<vmem>>, vector<1x8x256xf32>
    %58 = vector.shape_cast %57 : vector<1x8x256xf32> to vector<8x256xf32>
    %59 = vector.shape_cast %56 : vector<8x256xf32> to vector<1x8x256xf32>
    tpu.vector_store %arg4[%c0_49, %c0_50, %c0_51], %59 {strides = array<i32>} : memref<1x8x256xf32, #tpu.memory_space<vmem>>, vector<1x8x256xf32>,
    return
  }
  func.func @transform_0(%arg0: i32) -> (i32, i32, i32) {
    %c0_i32 = arith.constant 0 : i32
    %c0_i32_0 = arith.constant 0 : i32
    %c0_i32_1 = arith.constant 0 : i32
    return %arg0, %c0_i32, %c0_i32_0 : i32, i32, i32
  }
  func.func @transform_1(%arg0: i32) -> (i32, i32, i32) {
    %c0_i32 = arith.constant 0 : i32
    %c0_i32_0 = arith.constant 0 : i32
    %c0_i32_1 = arith.constant 0 : i32
    %c0_i32_2 = arith.constant 0 : i32
    return %c0_i32, %c0_i32_0, %c0_i32_1 : i32, i32, i32
  }
  func.func @transform_2(%arg0: i32) -> (i32, i32) {
    %c0_i32 = arith.constant 0 : i32
    %c0_i32_0 = arith.constant 0 : i32
    %c0_i32_1 = arith.constant 0 : i32
    return %c0_i32, %c0_i32_0 : i32, i32
  }
  func.func @transform_3(%arg0: i32) -> (i32, i32, i32) {
    %c0_i32 = arith.constant 0 : i32
    %c0_i32_0 = arith.constant 0 : i32
    %c0_i32_1 = arith.constant 0 : i32
    return %arg0, %c0_i32, %c0_i32_0 : i32, i32, i32
  }
}

</mosaic_0001>

<bundles_post_ra>
// kernel: conv2d_pallas.1
= control target key start
LH: loop header
LB: loop body
LE: loop exit
PB: predicated region body
PF: predicated region fallthrough
CT: control target
= control target key end

     0   :  { %s768_s12 = smov 0   ;;  %s857_s0 = inlined_call_operand.vmem [shape: bf16[2,8,384], index: 0, kind: input, shape index: {}]   ;;  %s858_s1 = inlined_call_operand.vmem [shape: bf16[9,8,8], index: 1, kind: input, shape index: {}]   ;;  %s859_s2 = inlined_call_operand.vmem [shape: f32[8,1], index: 2, kind: input, shape index: {}]   ;;  %s860_s3 = inlined_call_operand.vmem [shape: f32[2,8,256], index: 3, kind: output, shape index: {}]  }
   0x1 LB: > { %s675_s13 = sadd.s32 4294967295, %s737_s12   ;;  %p679_p0 = scmp.ge.s32.totalorder %s737_s12, 1  ;;  %s737_s12 = sphi %s768_s12, %s13_s12  }
   0x2   : > { %p137_p1 = scmp.lt.s32.totalorder %s737_s12, 3 }
   0x4   : > { %p138_p2 = pnand %p679_p0, %p137_p1 }
   0x5   : > { %p161_p3 = scmp.lt.s32.totalorder (!%p138_p2), %s675_s13, 1  ;;  %s739_s18 = smov (!%p138_p2), 127  }
   0x6   : > { %141 = sbr.rel (%p138_p2) target bundleno = 336 (0x150), region = 32  ;;  %s740_s19 = smov (!%p138_p2), 126  }
   0x7   : > { %s741_s20 = smov (!%p138_p2), 112   ;;  %s742_s21 = smov (!%p138_p2), 111  }
   0x8   : > { %s743_s22 = smov (!%p138_p2), 110   ;;  %s744_s23 = smov (!%p138_p2), 96  }
   0x9   : > { %s745_s24 = smov (!%p138_p2), 95   ;;  %s746_s25 = smov (!%p138_p2), 94  }
   0xb   : > { %s862_s13 = smov (!%p161_p3, %s675_s13), 1  ;;  %vm189_vm0 = vcmask 1043456   ;;  %v179_v10 = vld [vmem:[%s858_s1] sm:$0xf]  ;;  %vm185_vm1 = vcmask 64512   ;;  %vm290_vm2 = vcmask 1031168  }
   0xc   : > { %s712_s14 = smul.u32 12, %s862_s13  ;;  %v747_v12 = vmov 0   ;;  %v172_v13 = vld [vmem:[%s859_s2] sm:$0xff]  ;;  %v688_v17 = vld [vmem:[%s858_s1 + $0x8] sm:$0xf]  ;;  %vm242_vm3 = vcmask 1039360  }
   0xd   : > { %730 = vset.pattern.permute.xlu0 %v747_v12  ;;  %v685_v29 = vld [vmem:[%s858_s1 + $0x4] sm:$0xf]  ;;  %vm338_vm4 = vcmask 916480   ;;  %vm386_vm5 = vcmask 908288   ;;  %v691_v44 = vld [vmem:[%s858_s1 + $0xc] sm:$0xf] }
   0xe   : > { %s165_s17 = scalar_lea.vmem %s857_s0, %s712_s14  ;;  %v694_v45 = vld [vmem:[%s858_s1 + $0x10] sm:$0xf]  ;;  %vm434_vm6 = vcmask 900096   ;;  %vm482_vm7 = vcmask 785408   ;;  %v697_v59 = vld [vmem:[%s858_s1 + $0x14] sm:$0xf] }
   0xf   : > { %v225_v0 = vld [vmem:[%s165_s17 + $0x8] sm:$0xf]  ;;  %v224_v1 = vld [vmem:[%s165_s17] sm:$0xff]  ;;  %v700_v61 = vld [vmem:[%s858_s1 + $0x18] sm:$0xf]  ;;  %vm530_vm8 = vcmask 777216  }
  0x10   : > { %v232_v2 = vunpack.c.l.b16 %v225_v0  ;;  %v230_v3 = vunpack.c.l.b16 %v224_v1  ;;  %v231_v4 = vunpack.c.h.b16 %v224_v1  ;;  %vm578_vm9 = vcmask 769024   ;;  %v706_v12 = vld [vmem:[%s858_s1 + $0x20] sm:$0xf] }
  0x12   : > { %v235_v5 = vpack.c.b16 %v232_v2, %v232_v2  ;;  %v233_v6 = vpack.c.b16 %v230_v3, %v230_v3  ;;  %v234_v7 = vpack.c.b16 %v231_v4, %v231_v4 }
  0x14   : > { %240 = vrot.lane.b32.xlu1 %v235_v5, %s739_s18  ;;  %236 = vrot.lane.b32.xlu0 %v233_v6, %s739_s18  ;;  %v191_v8 = vsel %vm189_vm0, %v233_v6, 0  ;;  %v194_v9 = vsel %vm189_vm0, %v234_v7, 0 }
  0x15   : > { %286 = vrot.lane.b32.xlu2 %v234_v7, %s740_s19  ;;  %203 = vmatpush.bf16.msra.mxu0 %v191_v8 }
  0x16   : > { %216 = vmatpush.bf16.msra.mxu1 %v194_v9 }
  0x18   : > { %683 = vmatmul.msk.bf16.vlgmr.msra.gmra.mxu0 %vm185_vm1, %v179_v10 }
  0x19   : > { %684 = vmatmul.msk.bf16.vlgmr.msra.gmra.mxu1 %vm185_vm1, %v179_v10 }
  0x1c   : > { %284 = vrot.lane.b32.xlu1 %v233_v6, %s740_s19  ;;  %238 = vrot.lane.b32.xlu0 %v234_v7, %s739_s18 }
  0x1d   : > { %288 = vrot.lane.b32.xlu2 %v235_v5, %s740_s19 }
  0x24   : > { %334 = vrot.lane.b32.xlu1 %v234_v7, %s741_s20  ;;  %332 = vrot.lane.b32.xlu0 %v233_v6, %s741_s20 }
  0x25   : > { %336 = vrot.lane.b32.xlu2 %v235_v5, %s741_s20 }
  0x2c   : > { %382 = vrot.lane.b32.xlu1 %v234_v7, %s742_s21  ;;  %380 = vrot.lane.b32.xlu0 %v233_v6, %s742_s21 }
  0x2d   : > { %384 = vrot.lane.b32.xlu2 %v235_v5, %s742_s21  ;;  %s711_s21 = sshll.u32 %s862_s13, 4 }
  0x34   : > { %430 = vrot.lane.b32.xlu1 %v234_v7, %s743_s22  ;;  %428 = vrot.lane.b32.xlu0 %v233_v6, %s743_s22 }
  0x35   : > { %432 = vrot.lane.b32.xlu2 %v235_v5, %s743_s22 }
  0x3c   : > { %478 = vrot.lane.b32.xlu1 %v234_v7, %s744_s23  ;;  %476 = vrot.lane.b32.xlu0 %v233_v6, %s744_s23 }
  0x3d   : > { %480 = vrot.lane.b32.xlu2 %v235_v5, %s744_s23 }
  0x44   : > { %526 = vrot.lane.b32.xlu1 %v234_v7, %s745_s24  ;;  %524 = vrot.lane.b32.xlu0 %v233_v6, %s745_s24 }
  0x45   : > { %528 = vrot.lane.b32.xlu2 %v235_v5, %s745_s24  ;;  %s170_s24 = scalar_lea.vmem %s860_s3, %s711_s21 }
  0x4c   : > { %574 = vrot.lane.b32.xlu1 %v234_v7, %s746_s25  ;;  %572 = vrot.lane.b32.xlu0 %v233_v6, %s746_s25 }
  0x4d   : > { %576 = vrot.lane.b32.xlu2 %v235_v5, %s746_s25 }
  0x54   : > { %175 = vperm.xlu0 %730, %v172_v13  }
  0x6f   : > { %v287_v11 = vpop.permute.xlu2 %286 }
  0x77   : > { %v289_v14 = vpop.permute.xlu2 %288 }
  0x78   : > { %v292_v15 = vsel %vm290_vm2, %v287_v11, %v289_v14 }
  0x79   : > { %v300_v16 = vsel %vm189_vm0, %v292_v15, 0 }
  0x7a   : > { %322 = vmatpush.bf16.msrb.mxu1 %v300_v16 }
  0x7d   : > { %690 = vmatmul.msk.bf16.vlgmr.msrb.gmra.mxu1 %vm185_vm1, %v688_v17 }
  0x7f   : > { %v337_v20 = vpop.permute.xlu2 %336 }
  0x86   : > { %v241_v18 = vpop.permute.xlu1 %240  ;;  %v237_v19 = vpop.permute.xlu0 %236 }
  0x87   : > { %v385_v30 = vpop.permute.xlu2 %384 }
  0x8e   : > { %v285_v21 = vpop.permute.xlu1 %284  ;;  %v239_v22 = vpop.permute.xlu0 %238 }
  0x8f   : > { %v243_v23 = vsel %vm242_vm3, %v237_v19, %v239_v22  ;;  %v244_v24 = vsel %vm242_vm3, %v239_v22, %v241_v18  ;;  %v291_v25 = vsel %vm290_vm2, %v285_v21, %v287_v11  ;;  %v433_v37 = vpop.permute.xlu2 %432  ;;  %v703_v11 = vld [vmem:[%s858_s1 + $0x1c] sm:$0xf] }
  0x90   : > { %v249_v26 = vsel %vm189_vm0, %v243_v23, 0  ;;  %v252_v27 = vsel %vm189_vm0, %v244_v24, 0  ;;  %v297_v28 = vsel %vm189_vm0, %v291_v25, 0 }
  0x91   : > { %261 = vmatpush.bf16.msra.mxu2 %v249_v26  ;;  %274 = vmatpush.bf16.msra.mxu3 %v252_v27 }
  0x92   : > { %309 = vmatpush.bf16.msrb.mxu0 %v297_v28 }
  0x94   : > { %686 = vmatmul.msk.bf16.vlgmr.msra.gmra.mxu2 %vm185_vm1, %v685_v29  ;;  %687 = vmatmul.msk.bf16.vlgmr.msra.gmra.mxu3 %vm185_vm1, %v685_v29 }
  0x95   : > { %689 = vmatmul.msk.bf16.vlgmr.msrb.gmra.mxu0 %vm185_vm1, %v688_v17  ;;  %v205_v13 = vpop.f32.mrf.mxu0 }
  0x96   : > { %v335_v31 = vpop.permute.xlu1 %334  ;;  %v333_v32 = vpop.permute.xlu0 %332 }
  0x97   : > { %v339_v33 = vsel %vm338_vm4, %v333_v32, %v335_v31  ;;  %v340_v34 = vsel %vm338_vm4, %v335_v31, %v337_v20  ;;  %v481_v52 = vpop.permute.xlu2 %480  ;;  %v218_v14 = vpop.f32.mrf.mxu1 }
  0x98   : > { %v345_v35 = vsel %vm189_vm0, %v339_v33, 0  ;;  %v348_v36 = vsel %vm189_vm0, %v340_v34, 0 }
  0x99   : > { %357 = vmatpush.bf16.msrb.mxu2 %v345_v35  ;;  %370 = vmatpush.bf16.msrb.mxu3 %v348_v36 }
  0x9d   : > { %v207_v15 = vpop.f32.mrf.mxu0 }
  0x9e   : > { %v383_v38 = vpop.permute.xlu1 %382  ;;  %v381_v39 = vpop.permute.xlu0 %380 }
  0x9f   : > { %v388_v40 = vsel %vm386_vm5, %v383_v38, %v385_v30  ;;  %v387_v41 = vsel %vm386_vm5, %v381_v39, %v383_v38  ;;  %v529_v60 = vpop.permute.xlu2 %528  ;;  %v220_v16 = vpop.f32.mrf.mxu1 }
  0xa0   : > { %v396_v42 = vsel %vm189_vm0, %v388_v40, 0  ;;  %v393_v43 = vsel %vm189_vm0, %v387_v41, 0 }
  0xa1   : > { %405 = vmatpush.bf16.msra.mxu0 %v393_v43  ;;  %418 = vmatpush.bf16.msra.mxu1 %v396_v42 }
  0xa4   : > { %692 = vmatmul.msk.bf16.vlgmr.msrb.gmra.mxu2 %vm185_vm1, %v691_v44  ;;  %693 = vmatmul.msk.bf16.vlgmr.msrb.gmra.mxu3 %vm185_vm1, %v691_v44 }
  0xa5   : > { %695 = vmatmul.msk.bf16.vlgmr.msra.gmra.mxu0 %vm185_vm1, %v694_v45  ;;  %696 = vmatmul.msk.bf16.vlgmr.msra.gmra.mxu1 %vm185_vm1, %v694_v45 }
  0xa6   : > { %v431_v46 = vpop.permute.xlu1 %430  ;;  %v429_v47 = vpop.permute.xlu0 %428 }
  0xa7   : > { %v436_v48 = vsel %vm434_vm6, %v431_v46, %v433_v37  ;;  %v435_v49 = vsel %vm434_vm6, %v429_v47, %v431_v46  ;;  %v577_v4 = vpop.permute.xlu2 %576 }
  0xa8   : > { %v444_v50 = vsel %vm189_vm0, %v436_v48, 0  ;;  %v441_v51 = vsel %vm189_vm0, %v435_v49, 0 }
  0xa9   : > { %453 = vmatpush.bf16.msra.mxu2 %v441_v51  ;;  %466 = vmatpush.bf16.msra.mxu3 %v444_v50 }
  0xae   : > { %v479_v53 = vpop.permute.xlu1 %478  ;;  %v477_v54 = vpop.permute.xlu0 %476 }
  0xaf   : > { %v484_v55 = vsel %vm482_vm7, %v479_v53, %v481_v52  ;;  %v483_v56 = vsel %vm482_vm7, %v477_v54, %v479_v53 }
  0xb0   : > { %v492_v57 = vsel %vm189_vm0, %v484_v55, 0  ;;  %v489_v58 = vsel %vm189_vm0, %v483_v56, 0 }
  0xb1   : > { %501 = vmatpush.bf16.msrb.mxu0 %v489_v58  ;;  %514 = vmatpush.bf16.msrb.mxu1 %v492_v57 }
  0xb4   : > { %698 = vmatmul.msk.bf16.vlgmr.msra.gmra.mxu2 %vm185_vm1, %v697_v59  ;;  %699 = vmatmul.msk.bf16.vlgmr.msra.gmra.mxu3 %vm185_vm1, %v697_v59 }
  0xb5   : > { %701 = vmatmul.msk.bf16.vlgmr.msrb.gmra.mxu0 %vm185_vm1, %v700_v61  ;;  %702 = vmatmul.msk.bf16.vlgmr.msrb.gmra.mxu1 %vm185_vm1, %v700_v61 }
  0xb6   : > { %v527_v62 = vpop.permute.xlu1 %526  ;;  %v525_v63 = vpop.permute.xlu0 %524 }
  0xb7   : > { %v532_v0 = vsel %vm530_vm8, %v527_v62, %v529_v60  ;;  %v531_v1 = vsel %vm530_vm8, %v525_v63, %v527_v62 }
  0xb8   : > { %v540_v2 = vsel %vm189_vm0, %v532_v0, 0  ;;  %v537_v3 = vsel %vm189_vm0, %v531_v1, 0 }
  0xb9   : > { %549 = vmatpush.bf16.msrb.mxu2 %v537_v3  ;;  %562 = vmatpush.bf16.msrb.mxu3 %v540_v2 }
  0xbe   : > { %v575_v5 = vpop.permute.xlu1 %574  ;;  %v573_v6 = vpop.permute.xlu0 %572 }
  0xbf   : > { %v580_v7 = vsel %vm578_vm9, %v575_v5, %v577_v4  ;;  %v579_v8 = vsel %vm578_vm9, %v573_v6, %v575_v5 }
  0xc0   : > { %v588_v9 = vsel %vm189_vm0, %v580_v7, 0  ;;  %v585_v10 = vsel %vm189_vm0, %v579_v8, 0 }
  0xc1   : > { %597 = vmatpush.bf16.msra.mxu0 %v585_v10  ;;  %610 = vmatpush.bf16.msra.mxu1 %v588_v9 }
  0xc4   : > { %704 = vmatmul.msk.bf16.vlgmr.msrb.gmra.mxu2 %vm185_vm1, %v703_v11  ;;  %705 = vmatmul.msk.bf16.vlgmr.msrb.gmra.mxu3 %vm185_vm1, %v703_v11 }
  0xc5   : > { %707 = vmatmul.msk.bf16.vlgmr.msra.gmra.mxu0 %vm185_vm1, %v706_v12  ;;  %708 = vmatmul.msk.bf16.vlgmr.msra.gmra.mxu1 %vm185_vm1, %v706_v12 }
  0xc6   : > { %v176_v20 = vpop.permute.xlu0 %175 }
  0xc7   : > { %v223_v21 = vadd.f32 %v218_v14, %v176_v20  ;;  %v222_v39 = vadd.f32 %v205_v13, %v176_v20 }
  0xfa   : > { %v324_v17 = vpop.f32.mrf.mxu1 }
 0x102   : > { %v326_v18 = vpop.f32.mrf.mxu1 }
 0x112   : > { %v311_v19 = vpop.f32.mrf.mxu0 }
 0x117   : > { %v263_v22 = vpop.f32.mrf.mxu2  ;;  %v276_v23 = vpop.f32.mrf.mxu3 }
 0x118   : > { %v281_v24 = vadd.f32 %v276_v23, %v223_v21  ;;  %v280_v40 = vadd.f32 %v263_v22, %v222_v39 }
 0x11a   : > { %v313_v25 = vpop.f32.mrf.mxu0  ;;  %v329_v26 = vadd.f32 %v324_v17, %v281_v24  ;;  %v328_v43 = vadd.f32 %v311_v19, %v280_v40 }
 0x11f   : > { %v265_v27 = vpop.f32.mrf.mxu2  ;;  %v278_v28 = vpop.f32.mrf.mxu3 }
 0x122   : > { %v407_v29 = vpop.f32.mrf.mxu0  ;;  %v420_v30 = vpop.f32.mrf.mxu1 }
 0x127   : > { %v359_v31 = vpop.f32.mrf.mxu2  ;;  %v372_v32 = vpop.f32.mrf.mxu3 }
 0x128   : > { %v376_v46 = vadd.f32 %v359_v31, %v328_v43  ;;  %v377_v47 = vadd.f32 %v372_v32, %v329_v26 }
 0x12a   : > { %v409_v33 = vpop.f32.mrf.mxu0  ;;  %v422_v34 = vpop.f32.mrf.mxu1  ;;  %v424_v50 = vadd.f32 %v407_v29, %v376_v46  ;;  %v425_v51 = vadd.f32 %v420_v30, %v377_v47 }
 0x12f   : > { %v361_v35 = vpop.f32.mrf.mxu2  ;;  %v374_v36 = vpop.f32.mrf.mxu3 }
 0x132   : > { %v503_v37 = vpop.f32.mrf.mxu0  ;;  %v516_v38 = vpop.f32.mrf.mxu1 }
 0x137   : > { %v455_v41 = vpop.f32.mrf.mxu2  ;;  %v468_v42 = vpop.f32.mrf.mxu3 }
 0x138   : > { %v472_v52 = vadd.f32 %v455_v41, %v424_v50  ;;  %v473_v53 = vadd.f32 %v468_v42, %v425_v51 }
 0x13a   : > { %v505_v44 = vpop.f32.mrf.mxu0  ;;  %v518_v45 = vpop.f32.mrf.mxu1  ;;  %v520_v56 = vadd.f32 %v503_v37, %v472_v52  ;;  %v521_v57 = vadd.f32 %v516_v38, %v473_v53 }
 0x13f   : > { %v457_v48 = vpop.f32.mrf.mxu2  ;;  %v470_v49 = vpop.f32.mrf.mxu3 }
 0x142   : > { %v599_v54 = vpop.f32.mrf.mxu0  ;;  %v612_v55 = vpop.f32.mrf.mxu1 }
 0x147   : > { %v551_v58 = vpop.f32.mrf.mxu2  ;;  %v564_v59 = vpop.f32.mrf.mxu3 }
 0x148   : > { %v568_v60 = vadd.f32 %v551_v58, %v520_v56  ;;  %v569_v61 = vadd.f32 %v564_v59, %v521_v57 }
 0x14a   : > { %v616_v62 = vadd.f32 %v599_v54, %v568_v60  ;;  %v617_v63 = vadd.f32 %v612_v55, %v569_v61  ;;  %v601_v0 = vpop.f32.mrf.mxu0  ;;  %v614_v1 = vpop.f32.mrf.mxu1 }
 0x14c   : > { %618 = vst [vmem:[%s170_s24] sm:$0xff] %v616_v62 }
 0x14d   : > { %619 = vst [vmem:[%s170_s24 + $0x8] sm:$0xff] %v617_v63 }
 0x14f   : > { %v553_v2 = vpop.f32.mrf.mxu2  ;;  %v566_v3 = vpop.f32.mrf.mxu3 }
 0x150 PF: > { %s13_s12 = sadd.s32 1, %s737_s12  }
 0x151   : > { %p10_p4 = scmp.ge.s32.totalorder %s13_s12, 4  }
 0x153   :  { %12 = sbr.rel (!%p10_p4) target bundleno = 1 (0x1), region = 70 }

</bundles_post_ra>
